<compile_context>
chip_gen: v7x
topology: tpu7x:2x2x1
jax: 0.10.0
libtpu: 0.0.40
codegen_flags: <defaults>
</compile_context>

<pallas_src>
import numpy as np
import jax
import jax.numpy as jnp
from jax.experimental import pallas as pl
from jax.experimental.pallas import tpu as pltpu

_LANE = 128
_SUB = 8


def _cdiv(a, b):
    return -(-a // b)


def _round_up(n, m):
    return _cdiv(n, m) * m


def _pad_sublanes(n, itemsize):
    # sub-32-bit dtypes pack along sublanes: one vreg holds 32 // itemsize rows.
    return _round_up(n, max(_SUB, 32 // max(int(itemsize), 1)))


def _vmem_budget_bytes():
    """Per-generation budget for the double-buffered input tiles."""
    try:
        kind = jax.devices()[0].device_kind.lower()
    except Exception:
        kind = ""
    if "v5" in kind:       # v5e: smallest default scoped VMEM; roofline at modest tiles
        return 8 << 20
    return 24 << 20        # v6e / v7x (kept well under v7x's 64 MiB physical VMEM)


def _pick_tile_lanes(L, bytes_per_lane, budget_bytes, override):
    if override is not None:
        tl = max(_LANE, (int(override) // _LANE) * _LANE)
    else:
        tl = max(_LANE, int(budget_bytes // max(bytes_per_lane, 1)) // _LANE * _LANE)
    return L if tl >= L else tl


def _make_kernel(*, multiclass, C, thr_logit, ignore_idx, use_weights,
                 num_tiles, tiles_per_core, rem, has_invalid):
    J = tiles_per_core
    last = num_tiles - 1
    p_last, j_last = last // J, last % J          # static owner of the ragged tile

    def kernel(*refs):
        if use_weights:
            labels_ref, preds_ref, w_ref = refs[:3]
            corr_out, wsum_out, corr_sc, wsum_sc = refs[3:]
        else:
            labels_ref, preds_ref = refs[:2]
            corr_out, wsum_out, corr_sc, wsum_sc = refs[2:]

        p = pl.program_id(0)
        j = pl.program_id(1)
        tile_idx = p * J + j

        @pl.when(j == 0)
        def _init():
            corr_sc[0] = jnp.int32(0)
            wsum_sc[0] = jnp.float32(0.0)

        labels = labels_ref[...]                   # int32
        if multiclass:
            pr = preds_ref[...]                    # (N, C, TL)
            best = pr[:, 0, :]
            pred = jnp.zeros(labels.shape, jnp.int32)
            for c in range(1, C):                  # first-occurrence argmax (torch.max ties)
                pc = pr[:, c, :]
                upd = pc > best
                best = jnp.where(upd, pc, best)
                pred = jnp.where(upd, jnp.int32(c), pred)
            eq = pred == labels
        else:
            # sigmoid(x) > t  <=>  x > logit(t); threshold folded into the kernel
            # (boundary-equal inputs may differ from the sigmoid form by rounding).
            eq = (preds_ref[...] > thr_logit).astype(jnp.int32) == labels

        if use_weights:
            w = w_ref[...]
        else:
            w = (labels != ignore_idx).astype(jnp.float32)

        def _acc(eq_t, w_t):
            # per-step cross-lane reductions into tiny SMEM scalars (XLU + scalar path)
            corr_sc[0] += jnp.sum(eq_t.astype(jnp.int32))      # exact int count
            wsum_sc[0] += jnp.sum(w_t)

        if rem == 0:                               # no ragged lane tail at all
            if has_invalid:
                @pl.when(tile_idx < num_tiles)
                def _full():
                    _acc(eq, w)
            else:
                _acc(eq, w)
        else:
            @pl.when(tile_idx < last)              # full tiles: no mask work
            def _full():
                _acc(eq, w)

            @pl.when((p == p_last) & (j == j_last))  # only the last tile pays the mask
            def _ragged():
                lane = jax.lax.broadcasted_iota(jnp.int32, eq.shape, eq.ndim - 1)
                valid = lane < rem
                _acc(jnp.logical_and(eq, valid), jnp.where(valid, w, jnp.float32(0.0)))

        @pl.when(j == pl.num_programs(1) - 1)
        def _finalize():
            corr_out[...] = jnp.full(corr_out.shape, corr_sc[0], jnp.int32)
            wsum_out[...] = jnp.full(wsum_out.shape, wsum_sc[0], jnp.float32)

    return kernel


def accuracy_sums(labels2d, preds3d, weights2d, *, ignore_idx, thr_logit,
                  tile_lanes=None):
    """Fused Pallas reduction. Returns (correct_count int32, weight_sum f32)."""
    N, D = labels2d.shape
    C = preds3d.shape[1]
    use_w = weights2d is not None
    p_bytes = jnp.dtype(preds3d.dtype).itemsize   # preds dtype passes through (bf16 OK)

    if C == 1:
        # dense elementwise path: drop the class axis, fold batch into the slab
        T = N * D
        R = next(r for r in (8, 4, 2, 1) if T % r == 0)
        L = T // R
        labels = labels2d.reshape(R, L)            # metadata-only reshapes
        preds = preds3d.reshape(R, L)
        wts = weights2d.reshape(R, L) if use_w else None
        bpl = 2 * (_round_up(R, _SUB) * 4
                   + _pad_sublanes(R, p_bytes) * p_bytes
                   + (_round_up(R, _SUB) * 4 if use_w else 0))
    else:
        labels, preds, wts = labels2d, preds3d, weights2d
        L = D
        bpl = 2 * (_round_up(N, _SUB) * 4
                   + N * _pad_sublanes(C, p_bytes) * p_bytes
                   + (_round_up(N, _SUB) * 4 if use_w else 0))

    TL = _pick_tile_lanes(L, bpl, _vmem_budget_bytes(), tile_lanes)
    num_tiles = _cdiv(L, TL)
    # TODO(synk): query the real TensorCore count; a size-2 parallel axis is a
    # no-op on 1-TC v5e/v6e and splits the reduction across v7x's two cores.
    P = 2 if num_tiles >= 2 else 1
    J = _cdiv(num_tiles, P)
    rem = L % TL if TL < L else 0
    has_invalid = (P * J != num_tiles)             # at most one padded grid slot

    if has_invalid:
        blk = lambda p, j: jnp.minimum(p * J + j, num_tiles - 1)
    else:
        blk = lambda p, j: p * J + j

    if C == 1:
        in_specs = [pl.BlockSpec((R, TL), lambda p, j: (0, blk(p, j))),
                    pl.BlockSpec((R, TL), lambda p, j: (0, blk(p, j)))]
        inputs = [labels, preds]
        if use_w:
            in_specs.append(pl.BlockSpec((R, TL), lambda p, j: (0, blk(p, j))))
            inputs.append(wts)
    else:
        in_specs = [pl.BlockSpec((N, TL), lambda p, j: (0, blk(p, j))),
                    pl.BlockSpec((N, C, TL), lambda p, j: (0, 0, blk(p, j)))]
        inputs = [labels, preds]
        if use_w:
            in_specs.append(pl.BlockSpec((N, TL), lambda p, j: (0, blk(p, j))))
            inputs.append(wts)

    kernel = _make_kernel(multiclass=(C > 1), C=C, thr_logit=thr_logit,
                          ignore_idx=ignore_idx, use_weights=use_w,
                          num_tiles=num_tiles, tiles_per_core=J, rem=rem,
                          has_invalid=has_invalid)

    footprint = bpl * TL + (64 << 10)              # padded, double-buffered inputs
    vmem_limit = int(min(48 << 20, max(footprint + (8 << 20), 32 << 20)))

    corr, wsum = pl.pallas_call(
        kernel,
        out_shape=(jax.ShapeDtypeStruct((P, _SUB, _LANE), jnp.int32),
                   jax.ShapeDtypeStruct((P, _SUB, _LANE), jnp.float32)),
        grid=(P, J),
        in_specs=in_specs,
        out_specs=(pl.BlockSpec((1, _SUB, _LANE), lambda p, j: (p, 0, 0)),
                   pl.BlockSpec((1, _SUB, _LANE), lambda p, j: (p, 0, 0))),
        scratch_shapes=[pltpu.SMEM((1,), jnp.int32),
                        pltpu.SMEM((1,), jnp.float32)],
        compiler_params=pltpu.CompilerParams(
            dimension_semantics=("parallel", "arbitrary"),
            vmem_limit_bytes=vmem_limit),
    )(*inputs)

    # per-core partials -> totals
    return jnp.sum(corr[:, 0, 0]), jnp.sum(wsum[:, 0, 0])


class Accuracy:
    """JAX/Pallas port of the PyTorch Accuracy metric module."""

    def __init__(self, dim=1, ignore_idx=-1, threshold=0.5):
        self.total = jnp.zeros((1,), jnp.float32)
        self.count = jnp.zeros((1,), jnp.float32)
        self._ignore_idx = ignore_idx
        self._dim = dim
        self._threshold = threshold

    def __call__(self, labels, preds, weights=None, *, tile_lanes=None):
        C = preds.shape[self._dim]
        N = labels.shape[0]
        D = int(np.prod(labels.shape[1:])) if labels.ndim > 1 else 1

        if self._dim != 1:
            preds = jnp.moveaxis(preds, self._dim, 1)
        preds3d = preds.reshape(N, C, D)           # dtype passthrough (bf16 stays bf16)

        labels2d = labels.reshape(N, D).astype(jnp.int32)
        w2d = None if weights is None else weights.reshape(N, D).astype(jnp.float32)

        if C == 1:
            t = float(self._threshold)
            if 0.0 < t < 1.0:
                thr_logit = float(np.log(t) - np.log1p(-t))
            else:
                thr_logit = float(-np.inf) if t <= 0.0 else float(np.inf)
        else:
            thr_logit = 0.0                         # unused

        corr, wsum = accuracy_sums(labels2d, preds3d, w2d,
                                   ignore_idx=self._ignore_idx,
                                   thr_logit=thr_logit, tile_lanes=tile_lanes)

        self.total = self.total + corr.astype(jnp.float32)
        self.count = self.count + jnp.maximum(wsum, 1.0)   # torch.clamp(min=1.0)
        return self.value   # TODO(synk): PyTorch returns .cpu(); kept on device (no host sync).

    @property
    def value(self):
        return self.total / self.count


def reference_accuracy(labels, preds, weights=None, dim=1, ignore_idx=-1,
                       threshold=0.5):
    """Pure-JAX reference reproducing the PyTorch forward (fresh buffers)."""
    if preds.shape[dim] == 1:
        pred_labels = (jax.nn.sigmoid(preds) > threshold).astype(jnp.int32)
        pred_labels = jnp.squeeze(pred_labels, axis=dim)
    else:
        pred_labels = jnp.argmax(preds, axis=dim)
    N = labels.shape[0]
    labels2 = labels.reshape(N, -1)
    pred_labels = pred_labels.reshape(N, -1)
    if weights is None:
        w = (labels2 != ignore_idx).astype(jnp.float32)
    else:
        w = weights.reshape(N, -1).astype(jnp.float32)
    num_examples = jnp.maximum(jnp.sum(w), 1.0)
    total = jnp.sum((pred_labels == labels2).astype(jnp.float32))
    return total / num_examples


if __name__ == "__main__":
    key = jax.random.PRNGKey(0)
    ks = jax.random.split(key, 8)

    def check(name, labels, preds, weights=None, tile_lanes=None):
        m = Accuracy(dim=1, ignore_idx=-1, threshold=0.5)
        got = jax.block_until_ready(m(labels, preds, weights, tile_lanes=tile_lanes))
        ref = jax.block_until_ready(
            reference_accuracy(labels, preds, weights, dim=1, ignore_idx=-1,
                               threshold=0.5))
        assert np.allclose(np.asarray(got), np.asarray(ref), rtol=1e-5, atol=1e-5), \
            (name, np.asarray(got), np.asarray(ref))

    # --- small shapes: single full-extent tile ---------------------------------
    labels_a = jax.random.randint(ks[0], (2, 16, 16), -1, 4)
    preds_a = jax.random.normal(ks[1], (2, 4, 16, 16), dtype=jnp.float32)
    check("multiclass", labels_a, preds_a)

    labels_b = jax.random.randint(ks[2], (2, 16, 16), -1, 2)
    preds_b = jax.random.normal(ks[3], (2, 1, 16, 16), dtype=jnp.float32)
    check("sigmoid", labels_b, preds_b)

    weights_c = jax.random.uniform(ks[4], (2, 16, 16), dtype=jnp.float32)
    check("weighted", labels_a, preds_a, weights_c)

    # --- forced small lane tiles: exercise the 2-way parallel split, per-core
    # accumulation, the masked ragged tail, and (tile 1536) the clamped slot ----
    labels_d = jax.random.randint(ks[5], (2, 48, 80), -1, 4)
    preds_d = jax.random.normal(ks[6], (2, 4, 48, 80), dtype=jnp.float32)
    check("multiclass_tiled", labels_d, preds_d, tile_lanes=1024)
    check("multiclass_tiled_odd", labels_d, preds_d, tile_lanes=1536)

    labels_e = jax.random.randint(ks[5], (2, 48, 80), -1, 2)
    preds_e = jax.random.normal(ks[7], (2, 1, 48, 80), dtype=jnp.float32)
    check("sigmoid_tiled", labels_e, preds_e, tile_lanes=256)

    weights_f = jax.random.uniform(ks[4], (2, 48, 80), dtype=jnp.float32)
    check("weighted_tiled", labels_d, preds_d, weights_f, tile_lanes=1024)

    print("KERNEL_OK")
</pallas_src>

<mosaic_0001>
module attributes {stable_mosaic.version = 11 : i64} {
  func.func @kernel(%arg0: i32, %arg1: i32, %arg2: memref<2x256xi32, #tpu.memory_space<vmem>>, %arg3: memref<2x4x256xf32, #tpu.memory_space<vmem>>, %arg4: memref<1x8x128xi32, #tpu.memory_space<vmem>>, %arg5: memref<1x8x128xf32, #tpu.memory_space<vmem>>, %arg6: memref<1xi32, #tpu.memory_space<smem>>, %arg7: memref<1xf32, #tpu.memory_space<smem>>) attributes {dimension_semantics = [#tpu.dimension_semantics<parallel>, #tpu.dimension_semantics<arbitrary>], iteration_bounds = array<i64: 1, 1>, scalar_prefetch = 0 : i64, scratch_operands = 2 : i64, tpu.core_type = #tpu.core_type<tc>, window_params = [{transform_indices = @transform_0, window_bounds = array<i64: 2, 256>}, {transform_indices = @transform_1, window_bounds = array<i64: 2, 4, 256>}, {transform_indices = @transform_2, window_bounds = array<i64: 1, 8, 128>}, {transform_indices = @transform_3, window_bounds = array<i64: 1, 8, 128>}]} {
    %c0_i32 = arith.constant 0 : i32
    %0 = arith.cmpi eq, %arg1, %c0_i32 : i32
    %1 = arith.extui %0 : i1 to i32
    %c0_i32_0 = arith.constant 0 : i32
    %2 = arith.cmpi ne, %1, %c0_i32_0 : i32
    scf.if %2 {
      %c0_i32_13 = arith.constant 0 : i32
      %c0_14 = arith.constant 0 : index
      %48 = memref.load %arg6[%c0_14] : memref<1xi32, #tpu.memory_space<smem>>
      memref.store %c0_i32_13, %arg6[%c0_14] : memref<1xi32, #tpu.memory_space<smem>>
      %cst_15 = arith.constant 0.000000e+00 : f32
      %c0_16 = arith.constant 0 : index
      %49 = memref.load %arg7[%c0_16] : memref<1xf32, #tpu.memory_space<smem>>
      memref.store %cst_15, %arg7[%c0_16] : memref<1xf32, #tpu.memory_space<smem>>
    } else {
    }
    %c0 = arith.constant 0 : index
    %c0_1 = arith.constant 0 : index
    %3 = vector.load %arg2[%c0, %c0_1] : memref<2x256xi32, #tpu.memory_space<vmem>>, vector<2x256xi32>
    %c0_2 = arith.constant 0 : index
    %c0_3 = arith.constant 0 : index
    %c0_4 = arith.constant 0 : index
    %4 = vector.load %arg3[%c0_2, %c0_3, %c0_4] : memref<2x4x256xf32, #tpu.memory_space<vmem>>, vector<2x4x256xf32>
    %5 = vector.extract_strided_slice %4 {offsets = [0, 0, 0], sizes = [2, 1, 256], strides = [1, 1, 1]} : vector<2x4x256xf32> to vector<2x1x256xf32>
    %6 = vector.shape_cast %5 : vector<2x1x256xf32> to vector<2x256xf32>
    %c0_i32_5 = arith.constant 0 : i32
    %7 = vector.broadcast %c0_i32_5 : i32 to vector<2x256xi32>
    %8 = vector.extract_strided_slice %4 {offsets = [0, 1, 0], sizes = [2, 1, 256], strides = [1, 1, 1]} : vector<2x4x256xf32> to vector<2x1x256xf32>
    %9 = vector.shape_cast %8 : vector<2x1x256xf32> to vector<2x256xf32>
    %10 = arith.cmpf ogt, %9, %6 : vector<2x256xf32>
    %11 = arith.select %10, %9, %6 : vector<2x256xi1>, vector<2x256xf32>
    %c1_i32 = arith.constant 1 : i32
    %12 = vector.broadcast %c1_i32 : i32 to vector<2x256xi32>
    %13 = arith.select %10, %12, %7 : vector<2x256xi1>, vector<2x256xi32>
    %14 = vector.extract_strided_slice %4 {offsets = [0, 2, 0], sizes = [2, 1, 256], strides = [1, 1, 1]} : vector<2x4x256xf32> to vector<2x1x256xf32>
    %15 = vector.shape_cast %14 : vector<2x1x256xf32> to vector<2x256xf32>
    %16 = arith.cmpf ogt, %15, %11 : vector<2x256xf32>
    %17 = arith.select %16, %15, %11 : vector<2x256xi1>, vector<2x256xf32>
    %c2_i32 = arith.constant 2 : i32
    %18 = vector.broadcast %c2_i32 : i32 to vector<2x256xi32>
    %19 = arith.select %16, %18, %13 : vector<2x256xi1>, vector<2x256xi32>
    %20 = vector.extract_strided_slice %4 {offsets = [0, 3, 0], sizes = [2, 1, 256], strides = [1, 1, 1]} : vector<2x4x256xf32> to vector<2x1x256xf32>
    %21 = vector.shape_cast %20 : vector<2x1x256xf32> to vector<2x256xf32>
    %22 = arith.cmpf ogt, %21, %17 : vector<2x256xf32>
    %c3_i32 = arith.constant 3 : i32
    %23 = vector.broadcast %c3_i32 : i32 to vector<2x256xi32>
    %24 = arith.select %22, %23, %19 : vector<2x256xi1>, vector<2x256xi32>
    %25 = arith.cmpi eq, %24, %3 : vector<2x256xi32>
    %c-1_i32 = arith.constant -1 : i32
    %26 = vector.broadcast %c-1_i32 : i32 to vector<2x256xi32>
    %27 = arith.cmpi ne, %3, %26 : vector<2x256xi32>
    %28 = arith.extui %27 : vector<2x256xi1> to vector<2x256xi32>
    %29 = arith.sitofp %28 : vector<2x256xi32> to vector<2x256xf32>
    %c0_6 = arith.constant 0 : index
    %30 = memref.load %arg6[%c0_6] : memref<1xi32, #tpu.memory_space<smem>>
    %31 = arith.extui %25 : vector<2x256xi1> to vector<2x256xi32>
    %32 = vector.shape_cast %31 : vector<2x256xi32> to vector<1x2x256xi32>
    %cst = arith.constant dense<0> : vector<1xi32>
    %33 = vector.multi_reduction <add>, %32, %cst [1, 2] : vector<1x2x256xi32> to vector<1xi32>
    %34 = vector.shape_cast %33 : vector<1xi32> to vector<1x1x1xi32>
    %35 = vector.extract %34[0, 0, 0] : i32 from vector<1x1x1xi32>
    %36 = arith.addi %30, %35 : i32
    %c0_7 = arith.constant 0 : index
    %37 = memref.load %arg6[%c0_7] : memref<1xi32, #tpu.memory_space<smem>>
    memref.store %36, %arg6[%c0_7] : memref<1xi32, #tpu.memory_space<smem>>
    %c0_8 = arith.constant 0 : index
    %38 = memref.load %arg7[%c0_8] : memref<1xf32, #tpu.memory_space<smem>>
    %39 = vector.shape_cast %29 : vector<2x256xf32> to vector<1x2x256xf32>
    %cst_9 = arith.constant dense<0.000000e+00> : vector<1xf32>
    %40 = vector.multi_reduction <add>, %39, %cst_9 [1, 2] : vector<1x2x256xf32> to vector<1xf32>
    %41 = vector.shape_cast %40 : vector<1xf32> to vector<1x1x1xf32>
    %42 = vector.extract %41[0, 0, 0] : f32 from vector<1x1x1xf32>
    %43 = arith.addf %38, %42 : f32
    %c0_10 = arith.constant 0 : index
    %44 = memref.load %arg7[%c0_10] : memref<1xf32, #tpu.memory_space<smem>>
    memref.store %43, %arg7[%c0_10] : memref<1xf32, #tpu.memory_space<smem>>
    %c0_i32_11 = arith.constant 0 : i32
    %45 = arith.cmpi eq, %arg1, %c0_i32_11 : i32
    %46 = arith.extui %45 : i1 to i32
    %c0_i32_12 = arith.constant 0 : i32
    %47 = arith.cmpi ne, %46, %c0_i32_12 : i32
    scf.if %47 {
      %c0_13 = arith.constant 0 : index
      %48 = memref.load %arg6[%c0_13] : memref<1xi32, #tpu.memory_space<smem>>
      %49 = vector.broadcast %48 : i32 to vector<1x8x128xi32>
      %c0_14 = arith.constant 0 : index
      %c0_15 = arith.constant 0 : index
      %c0_16 = arith.constant 0 : index
      %50 = vector.load %arg4[%c0_14, %c0_15, %c0_16] : memref<1x8x128xi32, #tpu.memory_space<vmem>>, vector<1x8x128xi32>
      tpu.vector_store %arg4[%c0_14, %c0_15, %c0_16], %49 {strides = array<i32>} : memref<1x8x128xi32, #tpu.memory_space<vmem>>, vector<1x8x128xi32>,
      %c0_17 = arith.constant 0 : index
      %51 = memref.load %arg7[%c0_17] : memref<1xf32, #tpu.memory_space<smem>>
      %52 = vector.broadcast %51 : f32 to vector<1x8x128xf32>
      %c0_18 = arith.constant 0 : index
      %c0_19 = arith.constant 0 : index
      %c0_20 = arith.constant 0 : index
      %53 = vector.load %arg5[%c0_18, %c0_19, %c0_20] : memref<1x8x128xf32, #tpu.memory_space<vmem>>, vector<1x8x128xf32>
      tpu.vector_store %arg5[%c0_18, %c0_19, %c0_20], %52 {strides = array<i32>} : memref<1x8x128xf32, #tpu.memory_space<vmem>>, vector<1x8x128xf32>,
    } else {
    }
    return
  }
  func.func @transform_0(%arg0: i32, %arg1: i32) -> (i32, i32) {
    %c1_i32 = arith.constant 1 : i32
    %0 = arith.muli %arg0, %c1_i32 : i32
    %1 = arith.addi %0, %arg1 : i32
    %c0_i32 = arith.constant 0 : i32
    %c0_i32_0 = arith.constant 0 : i32
    return %c0_i32, %1 : i32, i32
  }
  func.func @transform_1(%arg0: i32, %arg1: i32) -> (i32, i32, i32) {
    %c1_i32 = arith.constant 1 : i32
    %0 = arith.muli %arg0, %c1_i32 : i32
    %1 = arith.addi %0, %arg1 : i32
    %c0_i32 = arith.constant 0 : i32
    %c0_i32_0 = arith.constant 0 : i32
    %c0_i32_1 = arith.constant 0 : i32
    return %c0_i32, %c0_i32_0, %1 : i32, i32, i32
  }
  func.func @transform_2(%arg0: i32, %arg1: i32) -> (i32, i32, i32) {
    %c0_i32 = arith.constant 0 : i32
    %c0_i32_0 = arith.constant 0 : i32
    %c0_i32_1 = arith.constant 0 : i32
    return %arg0, %c0_i32, %c0_i32_0 : i32, i32, i32
  }
  func.func @transform_3(%arg0: i32, %arg1: i32) -> (i32, i32, i32) {
    %c0_i32 = arith.constant 0 : i32
    %c0_i32_0 = arith.constant 0 : i32
    %c0_i32_1 = arith.constant 0 : i32
    return %arg0, %c0_i32, %c0_i32_0 : i32, i32, i32
  }
}

</mosaic_0001>

<bundles_post_ra>
// kernel: tpu_custom_call.1
= control target key start
LH: loop header
LB: loop body
LE: loop exit
PB: predicated region body
PF: predicated region fallthrough
CT: control target
= control target key end

     0   :  { %9 = vsyncpa [#allocation5], 0  ;;  %s430_s0 = inlined_call_operand.hbm [shape: s32[2,256], index: 0, kind: input, shape index: {}]   ;;  %s431_s1 = inlined_call_operand.hbm [shape: f32[2,4,256], index: 1, kind: input, shape index: {}]   ;;  %s432_s2 = inlined_call_operand.hbm [shape: s32[1,8,128], index: 2, kind: output, shape index: {0}]   ;;  %s433_s3 = inlined_call_operand.hbm [shape: f32[1,8,128], index: 3, kind: output, shape index: {1}]  }
   0x1   :  { %10 = vsyncpa [#allocation8], 0 }
   0x2   :  { %11 = vsyncpa [#allocation6], 0 }
   0x3   :  { %12 = vsyncpa [#allocation11], 0  ;;  %s337_s12 = smov [#allocation4]   ;;  %s338_s14 = smov [#allocation7]  }
   0x4   :  { %s23_s13 = sshll.u32 %s337_s12, 4  ;;  %s36_s15 = sshll.u32 %s338_s14, 4  ;;  %s24_s13 = int_to_ptr.vmem [resolvable:$true] %s23_s13  ;;  %s366_s15 = int_to_ptr.vmem [resolvable:$true] %s36_s15 }
   0x5   :  { %s241_s18 = scalar_lea.hbm %s430_s0, 64 }
   0x6   :  { %p242_p0 = scmp.ne.s32.totalorder %s430_s0, %s241_s18  ;;  %p245_p1 = scmp.lt.u32.totalorder %s241_s18, %s430_s0 }
   0x8   :  { %p247_p2 = pnand %p245_p1, %p242_p0 }
   0xa   :  { %250 = shalt.err (!%p247_p2)
}
   0xb   :  { %s251_s23 = scalar_lea.vmem %s24_s13, 64  ;;  %p256_p4 = scmp.lt.s32.totalorder %s24_s13, %s24_s13 }
   0xc   :  { %p252_p3 = scmp.ne.s32.totalorder %s24_s13, %s251_s23  ;;  %p257_p5 = scmp.lt.s32.totalorder %s251_s23, %s251_s23 }
   0xe   :  { %p258_p6 = por %p257_p5, %p256_p4 }
  0x10   :  { %p259_p7 = pnand %p258_p6, %p252_p3 }
  0x12   :  { %262 = shalt.err (!%p259_p7)
}
  0x13   :  { %26 = dma.hbm_to_vmem [thread:$0]  %s430_s0, 64, %s24_s13, [#allocation5]  }
  0x14   :  { %s263_s28 = scalar_lea.hbm %s431_s1, 256 }
  0x15   :  { %p264_p8 = scmp.ne.s32.totalorder %s431_s1, %s263_s28  ;;  %p267_p9 = scmp.lt.u32.totalorder %s263_s28, %s431_s1 }
  0x17   :  { %p269_p10 = pnand %p267_p9, %p264_p8 }
  0x19   :  { %272 = shalt.err (!%p269_p10)
}
  0x1a   :  { %s273_s6 = scalar_lea.vmem %s366_s15, 256  ;;  %p278_p12 = scmp.lt.s32.totalorder %s366_s15, %s366_s15 }
  0x1b   :  { %p274_p11 = scmp.ne.s32.totalorder %s366_s15, %s273_s6  ;;  %p279_p13 = scmp.lt.s32.totalorder %s273_s6, %s273_s6 }
  0x1d   :  { %p280_p0 = por %p279_p13, %p278_p12 }
  0x1f   :  { %p281_p1 = pnand %p280_p0, %p274_p11 }
  0x21   :  { %284 = shalt.err (!%p281_p1)
}
  0x22   :  { %s339_s0 = smov 128   ;;  %s340_s7 = smov 8  }
  0x23   :  { %42 = dma.hbm_to_vmem [thread:$0]  %s431_s1, 256, %s366_s15, [#allocation8], %s339_s0, %s339_s0, %s340_s7  }
  0x24   :  { %329 = dma.done.wait [#allocation5], 64  }
  0x25   :  { %330 = vsyncadd [#allocation5], 4294967232 }
  0x26   :  { %331 = dma.done.wait [#allocation8], 256  }
  0x27   :  { %332 = vsyncadd [#allocation8], 4294967040  ;;  %v105_v0 = vlaneseq  ;;  %v341_v1 = vmov 1983009808   ;;  %v61_v6 = vld [vmem:[#allocation4] sm:$0xf] }
  0x28   :  { %v103_v2 = vunpack.c.l.s4 %v341_v1  ;;  %v62_v7 = vld [vmem:[#allocation7] sm:$0xff]  ;;  %v63_v8 = vld [vmem:[#allocation7 + $0x8] sm:$0xff]  ;;  %vm113_vm0 = vcmp.ne.s32.totalorder %v61_v6, 4294967295  ;;  %v342_v11 = vmov 0.0   ;;  %vm172_vm1 = vcmask 1041408   ;;  %s344_s1 = smov [#allocation9]  }
  0x29   :  { %v106_v3 = vshrl.u32 %v105_v0, 7  ;;  %v66_v9 = vrot.slane %v62_v7, 7  ;;  %v67_v10 = vrot.slane %v63_v8, 7  ;;  %v227_v12 = vsel %vm113_vm0, 1.0, %v342_v11  ;;  %s203_s10 = sshll.u32 %s344_s1, 4  ;;  %s345_s11 = smov [#allocation10]   ;;  %s204_s10 = int_to_ptr.vmem [resolvable:$true] %s203_s10 }
  0x2a   :  { %v104_v4 = vunpack.c.0.s8 %v103_v2  ;;  %v343_v16 = vmov 0   ;;  %vm135_vm10 = vcmask 1043459   ;;  %s213_s12 = sshll.u32 %s345_s11, 4  ;;  %s285_s15 = scalar_lea.vmem %s204_s10, 128  ;;  %s399_s12 = int_to_ptr.vmem [resolvable:$true] %s213_s12 }
  0x2b   :  { %vm70_vm2 = vcmp.gt.f32.partialorder %v62_v7, %v66_v9  ;;  %vm71_vm3 = vcmp.gt.f32.partialorder %v63_v8, %v67_v10  ;;  %v121_v38 = vsub.s32 3, %v106_v3  ;;  %v125_v39 = vsub.s32 7, %v106_v3  ;;  %p286_p2 = scmp.ne.s32.totalorder %s204_s10, %s285_s15  ;;  %p290_p3 = scmp.lt.s32.totalorder %s204_s10, %s204_s10 }
  0x2c   :  { %v107_v5 = vsub.s32 %v104_v4, %v106_v3  ;;  %v72_v15 = vsel %vm70_vm2, %v62_v7, %v66_v9  ;;  %v74_v17 = vsel %vm70_vm2, 1, %v343_v16  ;;  %v73_v20 = vsel %vm71_vm3, %v63_v8, %v67_v10  ;;  %p291_p4 = scmp.lt.s32.totalorder %s285_s15, %s285_s15 }
  0x2d   :  { %v75_v21 = vsel %vm71_vm3, 1, %v343_v16  ;;  %v78_v22 = vrot.slane %v72_v15, 7  ;;  %v79_v23 = vrot.slane %v73_v20, 7  ;;  %v86_v24 = vrot.slane %v74_v17, 7 }
  0x2e   :  { %v168_v13 = vrot.slane %v227_v12, %v107_v5  ;;  %v108_v14 = vrot.slane %v61_v6, %v107_v5  ;;  %v87_v25 = vrot.slane %v75_v21, 7  ;;  %p292_p5 = por %p291_p4, %p290_p3 }
  0x2f   :  { %vm82_vm4 = vcmp.gt.f32.partialorder %v62_v7, %v78_v22  ;;  %vm83_vm5 = vcmp.gt.f32.partialorder %v63_v8, %v79_v23 }
  0x30   :  { %v169_v18 = vcombine.high %v168_v13, %v168_v13  ;;  %v173_v19 = vsel %vm172_vm1, %v168_v13, 0.0  ;;  %v109_v27 = vrot.slane %v108_v14, 5  ;;  %v110_v29 = vrot.slane %v108_v14, 6  ;;  %p293_p6 = pnand %p292_p5, %p286_p2 }
  0x31   :  { %v84_v30 = vsel %vm82_vm4, %v62_v7, %v78_v22  ;;  %v85_v31 = vsel %vm83_vm5, %v63_v8, %v79_v23  ;;  %v88_v32 = vsel %vm82_vm4, 2, %v86_v24  ;;  %v89_v33 = vsel %vm83_vm5, 2, %v87_v25 }
  0x32   :  { %v174_v26 = vsel %vm172_vm1, %v169_v18, 0.0  ;;  %v92_v34 = vrot.slane %v84_v30, 7  ;;  %v93_v35 = vrot.slane %v85_v31, 7  ;;  %v98_v36 = vrot.slane %v88_v32, 7 }
  0x33   :  { %v175_v28 = vadd.f32 %v174_v26, %v173_v19  ;;  %v99_v37 = vrot.slane %v89_v33, 7 }
  0x34   :  { %vm96_vm6 = vcmp.gt.f32.partialorder %v62_v7, %v92_v34  ;;  %vm97_vm7 = vcmp.gt.f32.partialorder %v63_v8, %v93_v35 }
  0x35   :  { %176 = vadd.xlane.f32.xlu0 %v175_v28  ;;  %v100_v40 = vsel %vm96_vm6, 3, %v98_v36  ;;  %v101_v41 = vsel %vm97_vm7, 3, %v99_v37 }
  0x36   :  { %vm111_vm8 = vcmp.eq.s32.totalorder %v100_v40, %v109_v27  ;;  %vm112_vm9 = vcmp.eq.s32.totalorder %v101_v41, %v110_v29 }
  0x37   :  { %v117_v42 = vsel %vm111_vm8, 1, %v343_v16  ;;  %v118_v43 = vsel %vm112_vm9, 1, %v343_v16 }
  0x38   :  { %v122_v44 = vrot.slane %v117_v42, %v121_v38  ;;  %v126_v45 = vrot.slane %v117_v42, %v125_v39  ;;  %v130_v46 = vrot.slane %v118_v43, %v121_v38  ;;  %v134_v47 = vrot.slane %v118_v43, %v125_v39 }
  0x3a   :  { %v136_v48 = vsel %vm135_vm10, %v122_v44, 0  ;;  %v137_v49 = vsel %vm135_vm10, %v126_v45, 0  ;;  %v138_v50 = vsel %vm135_vm10, %v130_v46, 0  ;;  %v139_v51 = vsel %vm135_vm10, %v134_v47, 0 }
  0x3b   :  { %v140_v52 = vadd.s32 %v137_v49, %v136_v48  ;;  %v141_v53 = vadd.s32 %v139_v51, %v138_v50 }
  0x3d   :  { %v142_v54 = vadd.s32 %v141_v53, %v140_v52 }
  0x3f   :  { %v144_v55 = vshrl.u32 %v142_v54, 16  ;;  %v143_v56 = vand.u32 65535, %v142_v54 }
  0x41   :  { %v146_v57 = vcvt.s32.f32 %v144_v55  ;;  %v145_v58 = vcvt.s32.f32 %v143_v56 }
  0x43   :  { %149 = vadd.xlane.f32.xlu0 %v146_v57  ;;  %147 = vadd.xlane.f32.xlu1 %v145_v58 }
  0xc2   :  { %v177_v59 = vpop.xlane.xlu0 %176 }
  0xc3   :  { %v178_v60 = vrot.slane %v177_v59, 4 }
  0xc5   :  { %v179_v61 = vadd.f32 %v178_v60, %v177_v59 }
  0xc7   :  { %v180_v62 = vrot.slane %v179_v61, 2 }
  0xc9   :  { %v181_v1 = vadd.f32 %v180_v62, %v179_v61 }
  0xcb   :  { %v182_v5 = vrot.slane %v181_v1, 1 }
  0xcd   :  { %v183_v8 = vadd.f32 %v182_v5, %v181_v1 }
  0xd0   :  { %v150_v63 = vpop.xlane.xlu0 %149  ;;  %v148_v0 = vpop.xlane.xlu1 %147 }
  0xd1   :  { %v152_v2 = vcvt.f32.s32 %v150_v63  ;;  %v151_v3 = vcvt.f32.s32 %v148_v0 }
  0xd3   :  { %v153_v4 = vshll.u32 %v152_v2, 16 }
  0xd5   :  { %v154_v6 = vadd.s32 %v153_v4, %v151_v3 }
  0xd7   :  { %v155_v7 = vrot.slane %v154_v6, 3 }
  0xd9   :  { %228 = vpush %v155_v7 }
  0xda   :  { %230 = vpush %v183_v8 }
 0x10a   :  { %s229_s13 = spop %228 }
 0x10b   :  { %v192_v9 = vstv %s229_s13  ;;  %s231_s14 = spop %230 }
 0x10c   :  { %193 = vst [vmem:[#allocation9] sm:$0xff] %v192_v9  ;;  %v195_v10 = vstv %s231_s14 }
 0x10d   :  { %196 = vst [vmem:[#allocation10] sm:$0xff] %v195_v10 }
 0x10e   :  { %296 = shalt.err (!%p293_p6)
}
 0x10f   :  { %s297_s18 = scalar_lea.hbm %s432_s2, 128 }
 0x110   :  { %p298_p7 = scmp.ne.s32.totalorder %s432_s2, %s297_s18  ;;  %p301_p8 = scmp.lt.u32.totalorder %s297_s18, %s432_s2 }
 0x112   :  { %p303_p9 = pnand %p301_p8, %p298_p7 }
 0x114   :  { %306 = shalt.err (!%p303_p9)
}
 0x115   :  { %206 = dma.vmem_to_hbm [thread:$0]  %s204_s10, 128, %s432_s2, [#allocation6]  }
 0x116   :  { %s307_s25 = scalar_lea.vmem %s399_s12, 128  ;;  %p312_p11 = scmp.lt.s32.totalorder %s399_s12, %s399_s12 }
 0x117   :  { %p308_p10 = scmp.ne.s32.totalorder %s399_s12, %s307_s25  ;;  %p313_p12 = scmp.lt.s32.totalorder %s307_s25, %s307_s25 }
 0x119   :  { %p314_p13 = por %p313_p12, %p312_p11 }
 0x11b   :  { %p315_p0 = pnand %p314_p13, %p308_p10 }
 0x11d   :  { %318 = shalt.err (!%p315_p0)
}
 0x11e   :  { %s319_s28 = scalar_lea.hbm %s433_s3, 128 }
 0x11f   :  { %p320_p1 = scmp.ne.s32.totalorder %s433_s3, %s319_s28  ;;  %p323_p2 = scmp.lt.u32.totalorder %s319_s28, %s433_s3 }
 0x121   :  { %p325_p3 = pnand %p323_p2, %p320_p1 }
 0x123   :  { %328 = shalt.err (!%p325_p3)
}
 0x124   :  { %216 = dma.vmem_to_hbm [thread:$0]  %s399_s12, 128, %s433_s3, [#allocation11]  }
 0x125   :  { %333 = dma.done.wait [#allocation6], 128  }
 0x126   :  { %334 = vsyncadd [#allocation6], 4294967168 }
 0x127   :  { %335 = dma.done.wait [#allocation11], 128  }
 0x128   :  { %336 = vsyncadd [#allocation11], 4294967168 }
 0x129   :  { %223 = vsyncpa [#allocation5], 1 }
 0x12a   :  { %224 = vsyncpa [#allocation8], 1 }
 0x12b   :  { %225 = vsyncpa [#allocation6], 1 }
 0x12c   :  { %226 = vsyncpa [#allocation11], 1 }

</bundles_post_ra>
